<compile_context>
chip_gen: v6e
topology: v6e:2x2x1
jax: 0.10.0
libtpu: 0.0.40
codegen_flags: <defaults>
</compile_context>

<pallas_src>
import functools
import math

import jax
import jax.numpy as jnp
import numpy as np
from jax import lax
from jax.experimental import pallas as pl
from jax.experimental.pallas import tpu as pltpu


def _adaptive_bins(size, out):
    """PyTorch AdaptiveAvg/MaxPool2d bin boundaries along one dimension."""
    return [((i * size) // out, ((i + 1) * size + out - 1) // out)
            for i in range(out)]


def _pick_tile(dim, max_tile, quantum):
    """Largest tile <= max_tile that is a multiple of `quantum` and divides
    `dim`; falls back to the full dim (always a legal block size)."""
    if dim <= max_tile:
        return dim
    t = (max_tile // quantum) * quantum
    while t >= quantum:
        if dim % t == 0:
            return t
        t -= quantum
    return dim


# ---------------------------------------------------------------------------
# Kernel 1: adaptive (avg / max / min) pooling to (1, 3) + fused gate matmul.
# One grid step per batch element; H is reduced first, then the W bins.
# TODO(synk): for very large images add an H-tile grid axis with VMEM scratch
# accumulation (P3) instead of a full (C, H, W) slab per step.
# ---------------------------------------------------------------------------
def _stats_gates_kernel(x_ref, w_ref, b_ref, gu_ref, gl_ref, *, bins, h_size):
    x = x_ref[...].astype(jnp.float32)            # (C, H, W)
    c = x.shape[0]

    col_sum = jnp.sum(x, axis=1)                  # (C, W)  reduce H first
    col_max = jnp.max(x, axis=1)
    col_min = jnp.min(x, axis=1)

    rows = []
    for lo, hi in bins:                           # averages
        s = jnp.sum(col_sum[:, lo:hi], axis=1) * (1.0 / float((hi - lo) * h_size))
        rows.append(s[None, :])                   # (1, C)
    for lo, hi in bins:                           # maxima
        rows.append(jnp.max(col_max[:, lo:hi], axis=1)[None, :])
    for lo, hi in bins:                           # minima
        rows.append(jnp.min(col_min[:, lo:hi], axis=1)[None, :])

    # mix[0, stat*3C + bin*C + c] == concat([avg, max, min], dim=2)[b, c, stat, bin]
    mix = jnp.concatenate(rows, axis=1)           # (1, 9C)

    g = jnp.dot(mix, w_ref[...], preferred_element_type=jnp.float32) + b_ref[...]
    g = jax.nn.sigmoid(g)                         # (1, 2C): [upper | lower]
    gu_ref[...] = g[:, :c]
    gl_ref[...] = g[:, c:]


# ---------------------------------------------------------------------------
# Kernel 2: elementwise variational shift on the flattened (B*C, H*W) view.
#   shift = (1 - wl) + ((1 + wu) - (1 - wl)) * eps,  out = x * shift
# eps is a hash of the global element index -> tiling independent.
# ---------------------------------------------------------------------------
def _shift_kernel(seed_ref, x_ref, gu_ref, gl_ref, o_ref, *, m_total):
    i = pl.program_id(0)
    j = pl.program_id(1)
    r_tile, m_tile = x_ref.shape

    rows = lax.broadcasted_iota(jnp.int32, (r_tile, m_tile), 0) + i * r_tile
    cols = lax.broadcasted_iota(jnp.int32, (r_tile, m_tile), 1) + j * m_tile
    flat = rows * m_total + cols                              # global index

    seed_u = seed_ref[0].astype(jnp.uint32) * jnp.uint32(0x9E3779B9)
    h = flat.astype(jnp.uint32) + seed_u
    # lowbias32-style integer hash (plain VPU ops).
    h = h ^ (h >> 16)
    h = h * jnp.uint32(0x7FEB352D)
    h = h ^ (h >> 15)
    h = h * jnp.uint32(0x846CA68B)
    h = h ^ (h >> 16)
    # uniform [0, 1): mantissa trick ([1, 2) float minus 1).
    mant = (h >> 9) | jnp.uint32(0x3F800000)
    eps = lax.bitcast_convert_type(mant, jnp.float32) - 1.0

    wu = gu_ref[...]                                          # (r_tile, 1)
    wl = gl_ref[...]
    lower = 1.0 - wl
    span = (1.0 + wu) - lower                                 # = wu + wl
    shift = lower + span * eps                                # broadcast over lanes
    o_ref[...] = (x_ref[...].astype(jnp.float32) * shift).astype(o_ref.dtype)


def _flat_w(w):
    # (O, Cin, 3, 3) -> (9*Cin, O), flattening order (kh, kw, cin) to match the
    # mix layout (stat, bin, channel) built in the stats kernel.
    o = w.shape[0]
    return jnp.transpose(w.astype(jnp.float32), (2, 3, 1, 0)).reshape(-1, o)


def vcs_forward(x, w_upper, b_upper, w_lower, b_lower, seed=0):
    B, C, H, W = x.shape
    bins = _adaptive_bins(W, 3)

    # Fuse the two tiny gate matmuls into one (9C, 2C) weight matrix.
    w2 = jnp.concatenate([_flat_w(w_upper), _flat_w(w_lower)], axis=1)   # (9C, 2C)
    b2 = jnp.concatenate([b_upper, b_lower]).reshape(1, 2 * C).astype(jnp.float32)

    gu3, gl3 = pl.pallas_call(
        functools.partial(_stats_gates_kernel, bins=bins, h_size=H),
        grid=(B,),
        out_shape=(jax.ShapeDtypeStruct((B, 1, C), jnp.float32),
                   jax.ShapeDtypeStruct((B, 1, C), jnp.float32)),
        in_specs=[
            pl.BlockSpec((None, C, H, W), lambda b: (b, 0, 0, 0)),   # x slab
            pl.BlockSpec((9 * C, 2 * C), lambda b: (0, 0)),          # fused W
            pl.BlockSpec((1, 2 * C), lambda b: (0, 0)),              # fused b
        ],
        out_specs=(pl.BlockSpec((None, 1, C), lambda b: (b, 0, 0)),
                   pl.BlockSpec((None, 1, C), lambda b: (b, 0, 0))),
        compiler_params=pltpu.CompilerParams(dimension_semantics=("parallel",)),
    )(x, w2, b2)

    gu = gu3.reshape(B, C)
    gl = gl3.reshape(B, C)

    # ---- lane-dense elementwise shift on the flattened view ----------------
    N = B * C
    M = H * W
    x2 = x.reshape(N, M)                    # free for contiguous NCHW
    gu2 = gu.reshape(N, 1)
    gl2 = gl.reshape(N, 1)

    r_tile = _pick_tile(N, 256, 8)          # sublane axis (batch*channel)
    m_tile = _pick_tile(M, 2048, 128)       # lane axis (spatial), lane-dense
    # per-block bytes <= 256*2048*4 = 2 MiB -> fits v7x scoped VMEM w/ 2x bufs.

    seed_arr = jnp.array([seed], dtype=jnp.int32)
    out2 = pl.pallas_call(
        functools.partial(_shift_kernel, m_total=M),
        grid=(N // r_tile, M // m_tile),
        out_shape=jax.ShapeDtypeStruct((N, M), x.dtype),
        in_specs=[
            pl.BlockSpec(memory_space=pltpu.MemorySpace.SMEM),        # seed
            pl.BlockSpec((r_tile, m_tile), lambda i, j: (i, j)),      # x
            pl.BlockSpec((r_tile, 1), lambda i, j: (i, 0)),           # gate upper
            pl.BlockSpec((r_tile, 1), lambda i, j: (i, 0)),           # gate lower
        ],
        out_specs=pl.BlockSpec((r_tile, m_tile), lambda i, j: (i, j)),
        compiler_params=pltpu.CompilerParams(
            dimension_semantics=("parallel", "parallel")),
    )(seed_arr, x2, gu2, gl2)

    return out2.reshape(B, C, H, W), (gu, gl)


# ---------------------------------------------------------------------------
# Pure-JAX reference for the deterministic part (the sigmoid gates).
# ---------------------------------------------------------------------------
def _ref_gates(x, w_upper, b_upper, w_lower, b_lower):
    _, _, _, W = x.shape
    bins = _adaptive_bins(W, 3)
    avg = jnp.stack([jnp.mean(x[:, :, :, lo:hi], axis=(2, 3)) for lo, hi in bins], -1)
    mx = jnp.stack([jnp.max(x[:, :, :, lo:hi], axis=(2, 3)) for lo, hi in bins], -1)
    mn = jnp.stack([jnp.min(x[:, :, :, lo:hi], axis=(2, 3)) for lo, hi in bins], -1)
    mix = jnp.stack([avg, mx, mn], axis=2)                # (B, C, 3, 3)

    def conv(w, b):
        return jax.nn.sigmoid(jnp.einsum("bcij,ocij->bo", mix, w) + b[None, :])

    return conv(w_upper, b_upper), conv(w_lower, b_lower)


if __name__ == "__main__":
    key = jax.random.PRNGKey(0)
    kx, k1, k2, k3, k4 = jax.random.split(key, 5)

    B, C, H, W = 2, 3, 16, 16   # dim=3 as in the module default
    x = jax.random.normal(kx, (B, C, H, W), dtype=jnp.float32)

    # Conv2d(dim, dim, 3) parameters, deterministic (kaiming-uniform-like).
    fan_in = C * 3 * 3
    bound = 1.0 / math.sqrt(fan_in)
    w_upper = jax.random.uniform(k1, (C, C, 3, 3), jnp.float32, -bound, bound)
    b_upper = jax.random.uniform(k2, (C,), jnp.float32, -bound, bound)
    w_lower = jax.random.uniform(k3, (C, C, 3, 3), jnp.float32, -bound, bound)
    b_lower = jax.random.uniform(k4, (C,), jnp.float32, -bound, bound)

    out, (gu, gl) = vcs_forward(x, w_upper, b_upper, w_lower, b_lower, seed=0)
    out = jax.block_until_ready(out)

    # 1) Deterministic gate path vs pure-JAX reference.
    gu_ref, gl_ref = _ref_gates(x, w_upper, b_upper, w_lower, b_lower)
    np.testing.assert_allclose(np.asarray(gu), np.asarray(gu_ref),
                               rtol=1e-4, atol=1e-5)
    np.testing.assert_allclose(np.asarray(gl), np.asarray(gl_ref),
                               rtol=1e-4, atol=1e-5)

    # 2) Stochastic shift: out/x must lie in [1 - wl, 1 + wu] per (b, c).
    xn = np.asarray(x)
    on = np.asarray(out)
    gun = np.asarray(gu)[:, :, None, None]
    gln = np.asarray(gl)[:, :, None, None]
    mask = np.abs(xn) > 1e-3
    ratio = np.where(mask, on / np.where(mask, xn, 1.0), 1.0)  # 1.0 is always in-range
    assert np.all(ratio >= (1.0 - gln) - 1e-4)
    assert np.all(ratio <= (1.0 + gun) + 1e-4)

    assert out.shape == x.shape
    assert np.all(np.isfinite(on))
    print("KERNEL_OK")
</pallas_src>

<mosaic_0001>
module attributes {stable_mosaic.version = 11 : i64} {
  func.func @_stats_gates_kernel(%arg0: i32, %arg1: memref<1x3x16x16xf32, #tpu.memory_space<vmem>>, %arg2: memref<27x6xf32, #tpu.memory_space<vmem>>, %arg3: memref<1x6xf32, #tpu.memory_space<vmem>>, %arg4: memref<1x1x3xf32, #tpu.memory_space<vmem>>, %arg5: memref<1x1x3xf32, #tpu.memory_space<vmem>>) attributes {dimension_semantics = [#tpu.dimension_semantics<parallel>], iteration_bounds = array<i64: 2>, scalar_prefetch = 0 : i64, scratch_operands = 0 : i64, tpu.core_type = #tpu.core_type<tc>, window_params = [{transform_indices = @transform_0, window_bounds = array<i64: 1, 3, 16, 16>}, {pipeline_mode = #tpu.pipeline_mode<synchronous>, transform_indices = @transform_1, window_bounds = array<i64: 27, 6>}, {pipeline_mode = #tpu.pipeline_mode<synchronous>, transform_indices = @transform_2, window_bounds = array<i64: 1, 6>}, {transform_indices = @transform_3, window_bounds = array<i64: 1, 1, 3>}, {transform_indices = @transform_4, window_bounds = array<i64: 1, 1, 3>}]} {
    %c0 = arith.constant 0 : index
    %c0_0 = arith.constant 0 : index
    %c0_1 = arith.constant 0 : index
    %c0_2 = arith.constant 0 : index
    %0 = vector.load %arg1[%c0, %c0_0, %c0_1, %c0_2] : memref<1x3x16x16xf32, #tpu.memory_space<vmem>>, vector<1x3x16x16xf32>
    %1 = vector.shape_cast %0 : vector<1x3x16x16xf32> to vector<3x16x16xf32>
    %cst = arith.constant dense<0.000000e+00> : vector<3x16xf32>
    %2 = vector.multi_reduction <add>, %1, %cst [1] : vector<3x16x16xf32> to vector<3x16xf32>
    %cst_3 = arith.constant dense<0xFF800000> : vector<3x16xf32>
    %3 = vector.multi_reduction <maximumf>, %1, %cst_3 [1] : vector<3x16x16xf32> to vector<3x16xf32>
    %cst_4 = arith.constant dense<0x7F800000> : vector<3x16xf32>
    %4 = vector.multi_reduction <minimumf>, %1, %cst_4 [1] : vector<3x16x16xf32> to vector<3x16xf32>
    %5 = vector.extract_strided_slice %2 {offsets = [0, 0], sizes = [3, 6], strides = [1, 1]} : vector<3x16xf32> to vector<3x6xf32>
    %cst_5 = arith.constant dense<0.000000e+00> : vector<3xf32>
    %6 = vector.multi_reduction <add>, %5, %cst_5 [1] : vector<3x6xf32> to vector<3xf32>
    %cst_6 = arith.constant 0.010416667 : f32
    %7 = vector.broadcast %cst_6 : f32 to vector<3xf32>
    %8 = arith.mulf %6, %7 : vector<3xf32>
    %9 = vector.shape_cast %8 : vector<3xf32> to vector<1x3xf32>
    %10 = vector.extract_strided_slice %2 {offsets = [0, 5], sizes = [3, 6], strides = [1, 1]} : vector<3x16xf32> to vector<3x6xf32>
    %cst_7 = arith.constant dense<0.000000e+00> : vector<3xf32>
    %11 = vector.multi_reduction <add>, %10, %cst_7 [1] : vector<3x6xf32> to vector<3xf32>
    %cst_8 = arith.constant 0.010416667 : f32
    %12 = vector.broadcast %cst_8 : f32 to vector<3xf32>
    %13 = arith.mulf %11, %12 : vector<3xf32>
    %14 = vector.shape_cast %13 : vector<3xf32> to vector<1x3xf32>
    %15 = vector.extract_strided_slice %2 {offsets = [0, 10], sizes = [3, 6], strides = [1, 1]} : vector<3x16xf32> to vector<3x6xf32>
    %cst_9 = arith.constant dense<0.000000e+00> : vector<3xf32>
    %16 = vector.multi_reduction <add>, %15, %cst_9 [1] : vector<3x6xf32> to vector<3xf32>
    %cst_10 = arith.constant 0.010416667 : f32
    %17 = vector.broadcast %cst_10 : f32 to vector<3xf32>
    %18 = arith.mulf %16, %17 : vector<3xf32>
    %19 = vector.shape_cast %18 : vector<3xf32> to vector<1x3xf32>
    %20 = vector.extract_strided_slice %3 {offsets = [0, 0], sizes = [3, 6], strides = [1, 1]} : vector<3x16xf32> to vector<3x6xf32>
    %cst_11 = arith.constant dense<0xFF800000> : vector<3xf32>
    %21 = vector.multi_reduction <maximumf>, %20, %cst_11 [1] : vector<3x6xf32> to vector<3xf32>
    %22 = vector.shape_cast %21 : vector<3xf32> to vector<1x3xf32>
    %23 = vector.extract_strided_slice %3 {offsets = [0, 5], sizes = [3, 6], strides = [1, 1]} : vector<3x16xf32> to vector<3x6xf32>
    %cst_12 = arith.constant dense<0xFF800000> : vector<3xf32>
    %24 = vector.multi_reduction <maximumf>, %23, %cst_12 [1] : vector<3x6xf32> to vector<3xf32>
    %25 = vector.shape_cast %24 : vector<3xf32> to vector<1x3xf32>
    %26 = vector.extract_strided_slice %3 {offsets = [0, 10], sizes = [3, 6], strides = [1, 1]} : vector<3x16xf32> to vector<3x6xf32>
    %cst_13 = arith.constant dense<0xFF800000> : vector<3xf32>
    %27 = vector.multi_reduction <maximumf>, %26, %cst_13 [1] : vector<3x6xf32> to vector<3xf32>
    %28 = vector.shape_cast %27 : vector<3xf32> to vector<1x3xf32>
    %29 = vector.extract_strided_slice %4 {offsets = [0, 0], sizes = [3, 6], strides = [1, 1]} : vector<3x16xf32> to vector<3x6xf32>
    %cst_14 = arith.constant dense<0x7F800000> : vector<3xf32>
    %30 = vector.multi_reduction <minimumf>, %29, %cst_14 [1] : vector<3x6xf32> to vector<3xf32>
    %31 = vector.shape_cast %30 : vector<3xf32> to vector<1x3xf32>
    %32 = vector.extract_strided_slice %4 {offsets = [0, 5], sizes = [3, 6], strides = [1, 1]} : vector<3x16xf32> to vector<3x6xf32>
    %cst_15 = arith.constant dense<0x7F800000> : vector<3xf32>
    %33 = vector.multi_reduction <minimumf>, %32, %cst_15 [1] : vector<3x6xf32> to vector<3xf32>
    %34 = vector.shape_cast %33 : vector<3xf32> to vector<1x3xf32>
    %35 = vector.extract_strided_slice %4 {offsets = [0, 10], sizes = [3, 6], strides = [1, 1]} : vector<3x16xf32> to vector<3x6xf32>
    %cst_16 = arith.constant dense<0x7F800000> : vector<3xf32>
    %36 = vector.multi_reduction <minimumf>, %35, %cst_16 [1] : vector<3x6xf32> to vector<3xf32>
    %37 = vector.shape_cast %36 : vector<3xf32> to vector<1x3xf32>
    %38 = tpu.concatenate %9, %14, %19, %22, %25, %28, %31, %34, %37 in 1 : vector<1x3xf32>, vector<1x3xf32>, vector<1x3xf32>, vector<1x3xf32>, vector<1x3xf32>, vector<1x3xf32>, vector<1x3xf32>, vector<1x3xf32>, vector<1x3xf32> -> vector<1x27xf32>
    %c0_17 = arith.constant 0 : index
    %c0_18 = arith.constant 0 : index
    %39 = vector.load %arg2[%c0_17, %c0_18] : memref<27x6xf32, #tpu.memory_space<vmem>>, vector<27x6xf32>
    %cst_19 = arith.constant dense<0.000000e+00> : vector<1x6xf32>
    %40 = tpu.matmul %38, %39, %cst_19 {dimension_numbers = #tpu.dot_dimension_numbers<[1], [0], [0], [1], [0, 0, 1, 1], [], []>} : vector<1x27xf32>, vector<27x6xf32>, vector<1x6xf32> -> vector<1x6xf32>
    %c0_20 = arith.constant 0 : index
    %c0_21 = arith.constant 0 : index
    %41 = vector.load %arg3[%c0_20, %c0_21] : memref<1x6xf32, #tpu.memory_space<vmem>>, vector<1x6xf32>
    %42 = arith.addf %40, %41 : vector<1x6xf32>
    %43 = arith.negf %42 : vector<1x6xf32>
    %44 = math.exp %43 : vector<1x6xf32>
    %cst_22 = arith.constant 1.000000e+00 : f32
    %45 = vector.broadcast %cst_22 : f32 to vector<1x6xf32>
    %46 = arith.addf %45, %44 : vector<1x6xf32>
    %47 = arith.divf %45, %46 : vector<1x6xf32>
    %48 = vector.extract_strided_slice %47 {offsets = [0, 0], sizes = [1, 3], strides = [1, 1]} : vector<1x6xf32> to vector<1x3xf32>
    %c0_23 = arith.constant 0 : index
    %c0_24 = arith.constant 0 : index
    %c0_25 = arith.constant 0 : index
    %49 = vector.load %arg4[%c0_23, %c0_24, %c0_25] : memref<1x1x3xf32, #tpu.memory_space<vmem>>, vector<1x1x3xf32>
    %50 = vector.shape_cast %49 : vector<1x1x3xf32> to vector<1x3xf32>
    %51 = vector.shape_cast %48 : vector<1x3xf32> to vector<1x1x3xf32>
    tpu.vector_store %arg4[%c0_23, %c0_24, %c0_25], %51 {strides = array<i32>} : memref<1x1x3xf32, #tpu.memory_space<vmem>>, vector<1x1x3xf32>,
    %52 = vector.extract_strided_slice %47 {offsets = [0, 3], sizes = [1, 3], strides = [1, 1]} : vector<1x6xf32> to vector<1x3xf32>
    %c0_26 = arith.constant 0 : index
    %c0_27 = arith.constant 0 : index
    %c0_28 = arith.constant 0 : index
    %53 = vector.load %arg5[%c0_26, %c0_27, %c0_28] : memref<1x1x3xf32, #tpu.memory_space<vmem>>, vector<1x1x3xf32>
    %54 = vector.shape_cast %53 : vector<1x1x3xf32> to vector<1x3xf32>
    %55 = vector.shape_cast %52 : vector<1x3xf32> to vector<1x1x3xf32>
    tpu.vector_store %arg5[%c0_26, %c0_27, %c0_28], %55 {strides = array<i32>} : memref<1x1x3xf32, #tpu.memory_space<vmem>>, vector<1x1x3xf32>,
    return
  }
  func.func @transform_0(%arg0: i32) -> (i32, i32, i32, i32) {
    %c0_i32 = arith.constant 0 : i32
    %c0_i32_0 = arith.constant 0 : i32
    %c0_i32_1 = arith.constant 0 : i32
    %c0_i32_2 = arith.constant 0 : i32
    return %arg0, %c0_i32, %c0_i32_0, %c0_i32_1 : i32, i32, i32, i32
  }
  func.func @transform_1(%arg0: i32) -> (i32, i32) {
    %c0_i32 = arith.constant 0 : i32
    %c0_i32_0 = arith.constant 0 : i32
    %c0_i32_1 = arith.constant 0 : i32
    return %c0_i32, %c0_i32_0 : i32, i32
  }
  func.func @transform_2(%arg0: i32) -> (i32, i32) {
    %c0_i32 = arith.constant 0 : i32
    %c0_i32_0 = arith.constant 0 : i32
    %c0_i32_1 = arith.constant 0 : i32
    return %c0_i32, %c0_i32_0 : i32, i32
  }
  func.func @transform_3(%arg0: i32) -> (i32, i32, i32) {
    %c0_i32 = arith.constant 0 : i32
    %c0_i32_0 = arith.constant 0 : i32
    %c0_i32_1 = arith.constant 0 : i32
    return %arg0, %c0_i32, %c0_i32_0 : i32, i32, i32
  }
  func.func @transform_4(%arg0: i32) -> (i32, i32, i32) {
    %c0_i32 = arith.constant 0 : i32
    %c0_i32_0 = arith.constant 0 : i32
    %c0_i32_1 = arith.constant 0 : i32
    return %arg0, %c0_i32, %c0_i32_0 : i32, i32, i32
  }
}

</mosaic_0001>

<bundles_post_ra>
// kernel: tpu_custom_call.1
= control target key start
LH: loop header
LB: loop body
LE: loop exit
PB: predicated region body
PF: predicated region fallthrough
CT: control target
= control target key end

     0   :  { %10 = vsyncpa [#allocation3], 0  ;;  %s1154_s0 = inlined_call_operand.hbm [shape: f32[2,3,16,16], index: 0, kind: input, shape index: {}]   ;;  %s1155_s1 = inlined_call_operand.vmem [shape: f32[27,6], index: 1, kind: input, shape index: {}]   ;;  %s1156_s2 = inlined_call_operand.vmem [shape: f32[1,6], index: 2, kind: input, shape index: {}]   ;;  %s1157_s3 = inlined_call_operand.hbm [shape: f32[2,1,3], index: 3, kind: output, shape index: {0}]   ;;  %s1158_s4 = inlined_call_operand.hbm [shape: f32[2,1,3], index: 4, kind: output, shape index: {1}]  }
   0x1   :  { %12 = vsyncpa [#allocation3 + $0x1], 0 }
   0x2   :  { %13 = vsyncpa [#allocation4], 0 }
   0x3   :  { %15 = vsyncpa [#allocation4 + $0x1], 0 }
   0x4   :  { %16 = vsyncpa [#allocation7], 0 }
   0x5   :  { %18 = vsyncpa [#allocation7 + $0x1], 0  ;;  %s924_s15 = smov 0   ;;  %s926_s16 = smov 0  }
   0x6   :  { %s928_s17 = smov 0   ;;  %s930_s18 = smov 0  }
   0x7 LB: > { %s945_s19 = sadd.s32 4294967295, %s887_s18   ;;  %s672_s20 = sadd.s32 4294967294, %s887_s18   ;;  %s887_s18 = sphi %s930_s18, %s1172_s18   ;;  %s883_s17 = sphi %s928_s17, %s1171_s17   ;;  %s879_s16 = sphi %s926_s16, %s1170_s16   ;;  %s875_s15 = sphi %s924_s15, %s1169_s15  }
   0x8   : > { %s949_s21 = sadd.s32 1, %s887_s18   ;;  %s31_s22 = sadd.s32 1, %s883_s17 }
   0x9   : > { %s28_s23 = ssub.s32 %s887_s18, %s949_s21  ;;  %p38_p0 = scmp.ne.s32.totalorder %s883_s17, %s879_s16 }
   0xa   : > { %p29_p1 = scmp.eq.s32.totalorder %s28_s23, 0  ;;  %p39_p2 = scmp.eq.s32.totalorder %s887_s18, 0 }
   0xb   : > { %p44_p3 = scmp.ne.s32.totalorder %s879_s16, %s875_s15  ;;  %p45_p4 = scmp.eq.s32.totalorder %s945_s19, 0 }
   0xc   : > { %s961_s24 = scalar_select %p29_p1, %s883_s17, %s31_s22  }
   0xd   : > { %p40_p5 = por %p39_p2, %p38_p0  ;;  %p963_p6 = por %p45_p4, %p44_p3 }
   0xe   : > { %p110_p7 = scmp.eq.s32.totalorder %s945_s19, 1  ;;  %p116_p8 = scmp.eq.s32.totalorder %s672_s20, 1 }
   0xf   : > { %s1161_s25 = scalar_select %p963_p6, 1, 0 }
  0x10   : > { %p720_p10 = scmp.lt.s32.totalorder %s887_s18, 2  ;;  %p970_p11 = por %p110_p7, %p38_p0 }
  0x11   : > { %p974_p12 = por %p116_p8, %p44_p3  ;;  %s168_s28 = sand.u32 1, %s883_s17  }
  0x12   : > { %s1162_s26 = scalar_select %p970_p11, 1, 0 }
  0x13   : > { %s1163_s27 = scalar_select %p974_p12, 1, 0 }
  0x14   : > { %s701_s29 = smul.u32 768, %s887_s18  ;;  %p985_p13 = pnand %p720_p10, %p40_p5 }
  0x15   : > { %s700_s30 = smul.u32 48, %s168_s28  ;;  %s991_s11 = scalar_lea.sflag [#allocation3], %s168_s28 }
  0x16   : > { %s983_s7 = scalar_lea.hbm %s1154_s0, %s701_s29  ;;  %p767_p1 = pneg %p985_p13 }
  0x17   : > { %s172_s9 = scalar_lea.vmem [#allocation2], %s700_s30  ;;  %s765_s12 = scalar_lea.hbm %s983_s7, 768 }
  0x18   : > { %s179_s10 = sshll.u32 %s172_s9, 4  ;;  %p766_p0 = scmp.ne.s32.totalorder %s983_s7, %s765_s12  ;;  %s989_s10 = int_to_ptr.vmem [resolvable:$true] %s179_s10 }
  0x19   : > { %s770_s20 = scalar_lea.hbm %s1154_s0, 1536  ;;  %p771_p4 = scmp.lt.s32.totalorder %s983_s7, %s1154_s0 }
  0x1a   : > { %p768_p2 = pnand %p767_p1, %p766_p0  ;;  %p772_p5 = scmp.lt.s32.totalorder %s770_s20, %s765_s12 }
  0x1c   : > { %p769_p3 = pneg %p768_p2  ;;  %p773_p7 = por %p772_p5, %p771_p4 }
  0x1e   : > { %p774_p8 = pnand %p773_p7, %p769_p3 }
  0x20   : > { %777 = shalt.err (!%p774_p8)
}
  0x21   : > { %s778_s28 = scalar_lea.vmem %s989_s10, 768  ;;  %s889_s29 = smov [#allocation2]  }
  0x22   : > { %p779_p10 = scmp.ne.s32.totalorder %s989_s10, %s778_s28  ;;  %s783_s30 = sshll.u32 %s889_s29, 4  ;;  %s784_s30 = int_to_ptr.vmem [resolvable:$false] %s783_s30 }
  0x23   : > { %s785_s5 = scalar_lea.vmem %s784_s30, 1536  ;;  %p786_p2 = scmp.lt.s32.totalorder %s989_s10, %s784_s30 }
  0x24   : > { %p781_p9 = pnand %p779_p10, %p767_p1  ;;  %p787_p12 = scmp.lt.s32.totalorder %s785_s5, %s778_s28 }
  0x26   : > { %p782_p0 = pneg %p781_p9  ;;  %p788_p11 = por %p787_p12, %p786_p2 }
  0x28   : > { %p789_p6 = pnand %p788_p11, %p782_p0 }
  0x2a   : > { %792 = shalt.err (!%p789_p6)
}
  0x2b   : > { %s890_s6 = smov 128   ;;  %s891_s9 = smov 8  }
  0x2c   : > { %712 = dma.hbm_to_vmem [thread:$0]  (!%p985_p13), %s983_s7, 768, %s989_s10, %s991_s11, %s890_s6, %s890_s6, %s891_s9  }
  0x2d   : > { %p676_p9 = scmp.ge.s32.totalorder %s887_s18, 1  ;;  %p187_p1 = scmp.lt.s32.totalorder %s887_s18, 3 }
  0x2f   : > { %p188_p3 = pnand %p676_p9, %p187_p1 }
  0x30   : > { %s1015_s12 = sand.u32 (!%p188_p3), 1, %s879_s16   ;;  %p1165_p6 = scmp.ne.s32.totalorder (!%p188_p3), %s1161_s25, 0 }
  0x31   : > { %191 = sbr.rel (%p188_p3) target bundleno = 710 (0x2c6), region = 32  ;;  %s194_s14 = scalar_lea.sflag (!%p188_p3), [#allocation3], %s1015_s12 }
  0x32   : > { %s702_s13 = smul.u32 (!%p188_p3), 48, %s1015_s12 }
  0x34   : > { %s197_s20 = scalar_lea.vmem (!%p188_p3), [#allocation2], %s702_s13 }
  0x36   : > { %862 = dma.done.wait (%p1165_p6), %s194_s14, 768  }
  0x37   : > { %864 = vsyncadd (%p1165_p6), %s194_s14, 4294966528  ;;  %vm231_vm0 = vcmask 130048   ;;  %v225_v0 = vld [vmem:[%s197_s20] sm:$0xff]  ;;  %v226_v1 = vld [vmem:[%s197_s20 + $0x8] sm:$0xff]  ;;  %vm316_vm1 = vcmask 1041409   ;;  %vm318_vm2 = vcmask 1042434  }
  0x38   : > { %v227_v2 = vld [vmem:[%s197_s20 + $0x10] sm:$0xff]  ;;  %v228_v3 = vld [vmem:[%s197_s20 + $0x18] sm:$0xff]  ;;  %v1023_v4 = vld [vmem:[%s197_s20 + $0x20] sm:$0xff]  ;;  %v232_v6 = vsel %vm231_vm0, %v225_v0, 0.0  ;;  %v233_v7 = vsel %vm231_vm0, %v226_v1, 0.0  ;;  %v259_v15 = vsel %vm231_vm0, %v225_v0, -inf }
  0x39   : > { %v1025_v5 = vld [vmem:[%s197_s20 + $0x28] sm:$0xff]  ;;  %v241_v8 = vsel %vm231_vm0, %v227_v2, 0.0  ;;  %v234_v9 = vadd.f32 %v233_v7, %v232_v6  ;;  %v242_v10 = vsel %vm231_vm0, %v228_v3, 0.0  ;;  %v250_v11 = vsel %vm231_vm0, %v1023_v4, 0.0  ;;  %s892_s25 = smov 123   ;;  %s893_s7 = smov 118  }
  0x3a   : > { %v251_v12 = vsel %vm231_vm0, %v1025_v5, 0.0  ;;  %v243_v13 = vadd.f32 %v242_v10, %v241_v8  ;;  %v260_v16 = vsel %vm231_vm0, %v226_v1, -inf  ;;  %v268_v19 = vsel %vm231_vm0, %v227_v2, -inf  ;;  %s680_s9 = sshll.u32 %s945_s19, 4  ;;  %s218_s13 = scalar_lea.vmem [#allocation5], %s1015_s12 }
  0x3b   : > { %v252_v14 = vadd.f32 %v251_v12, %v250_v11  ;;  %v235_v17 = vrot.slane %v234_v9, 4  ;;  %v261_v18 = vmax.f32 %v259_v15, %v260_v16  ;;  %v269_v20 = vsel %vm231_vm0, %v228_v3, -inf  ;;  %s565_s14 = sshll.u32 %s218_s13, 4  ;;  %s896_s8 = smov 125   ;;  %s1086_s14 = int_to_ptr.vmem [resolvable:$true] %s565_s14 }
  0x3c   : > { %v244_v21 = vrot.slane %v243_v13, 4  ;;  %v270_v23 = vmax.f32 %v268_v19, %v269_v20  ;;  %v277_v24 = vsel %vm231_vm0, %v1023_v4, -inf  ;;  %v278_v27 = vsel %vm231_vm0, %v1025_v5, -inf  ;;  %s549_s10 = scalar_lea.sflag [#allocation4], %s1015_s12  ;;  %s793_s11 = scalar_lea.vmem %s1086_s14, 16 }
  0x3d   : > { %v253_v22 = vrot.slane %v252_v14, 4  ;;  %v236_v25 = vadd.f32 %v235_v17, %v234_v9  ;;  %v262_v26 = vrot.slane %v261_v18, 4  ;;  %v286_v28 = vsel %vm231_vm0, %v225_v0, inf  ;;  %p794_p11 = scmp.ne.s32.totalorder %s1086_s14, %s793_s11  ;;  %p1166_p12 = scmp.ne.s32.totalorder %s1162_s26, 0 }
  0x3e   : > { %v245_v29 = vadd.f32 %v244_v21, %v243_v13  ;;  %v271_v31 = vrot.slane %v270_v23, 4  ;;  %v279_v32 = vmax.f32 %v277_v24, %v278_v27  ;;  %v287_v35 = vsel %vm231_vm0, %v226_v1, inf  ;;  %s897_s22 = smov [#allocation5]  }
  0x3f   : > { %v254_v30 = vadd.f32 %v253_v22, %v252_v14  ;;  %v237_v33 = vrot.slane %v236_v25, 2  ;;  %v263_v34 = vmax.f32 %v261_v18, %v262_v26  ;;  %v295_v36 = vsel %vm231_vm0, %v227_v2, inf  ;;  %p795_p13 = pnand %p794_p11, %p1166_p12  ;;  %s797_s23 = sshll.u32 %s897_s22, 4  ;;  %s798_s23 = int_to_ptr.vmem [resolvable:$false] %s797_s23 }
  0x40   : > { %v246_v37 = vrot.slane %v245_v29, 2  ;;  %v272_v39 = vmax.f32 %v270_v23, %v271_v31  ;;  %v280_v40 = vrot.slane %v279_v32, 4  ;;  %v288_v43 = vmin.f32 %v286_v28, %v287_v35  ;;  %s799_s28 = scalar_lea.vmem %s798_s23, 32  ;;  %p800_p5 = scmp.lt.s32.totalorder %s1086_s14, %s798_s23 }
  0x41   : > { %v255_v38 = vrot.slane %v254_v30, 2  ;;  %v238_v41 = vadd.f32 %v237_v33, %v236_v25  ;;  %v264_v42 = vrot.slane %v263_v34, 2  ;;  %v296_v44 = vsel %vm231_vm0, %v228_v3, inf  ;;  %p796_p4 = pneg %p795_p13  ;;  %p801_p7 = scmp.lt.s32.totalorder %s799_s28, %s793_s11 }
  0x42   : > { %v247_v45 = vadd.f32 %v246_v37, %v245_v29  ;;  %v273_v47 = vrot.slane %v272_v39, 2  ;;  %v281_v48 = vmax.f32 %v279_v32, %v280_v40  ;;  %v289_v51 = vrot.slane %v288_v43, 4 }
  0x43   : > { %v256_v46 = vadd.f32 %v255_v38, %v254_v30  ;;  %v239_v49 = vrot.slane %v238_v41, 1  ;;  %v265_v50 = vmax.f32 %v263_v34, %v264_v42  ;;  %v297_v59 = vmin.f32 %v295_v36, %v296_v44  ;;  %v454_v42 = vld [vmem:[%s1155_s1 + $0x10] sm:$0xff]  ;;  %v452_v44 = vld [vmem:[%s1155_s1] sm:$0xff]  ;;  %p802_p8 = por %p801_p7, %p800_p5 }
  0x44   : > { %v248_v52 = vrot.slane %v247_v45, 1  ;;  %v274_v54 = vmax.f32 %v272_v39, %v273_v47  ;;  %v282_v55 = vrot.slane %v281_v48, 2  ;;  %v290_v58 = vmin.f32 %v288_v43, %v289_v51  ;;  %v453_v43 = vld [vmem:[%s1155_s1 + $0x8] sm:$0xff] }
  0x45   : > { %v257_v53 = vrot.slane %v256_v46, 1  ;;  %v240_v56 = vadd.f32 %v239_v49, %v238_v41  ;;  %v266_v57 = vrot.slane %v265_v50, 1  ;;  %vm321_vm3 = vcmask 43008   ;;  %v455_v41 = vld [vmem:[%s1155_s1 + $0x18] sm:$0x7]  ;;  %p803_p10 = pnand %p802_p8, %p796_p4 }
  0x46   : > { %v249_v60 = vadd.f32 %v248_v52, %v247_v45  ;;  %v275_v62 = vrot.slane %v274_v54, 1  ;;  %v283_v63 = vmax.f32 %v281_v48, %v282_v55  ;;  %v291_v1 = vrot.slane %v290_v58, 2 }
  0x47   : > { %v258_v61 = vadd.f32 %v257_v53, %v256_v46  ;;  %v267_v0 = vmax.f32 %v265_v50, %v266_v57  ;;  %v298_v2 = vrot.slane %v297_v59, 4  ;;  %v304_v8 = vsel %vm231_vm0, %v1023_v4, inf }
  0x48   : > { %v317_v3 = vsel %vm316_vm1, %v249_v60, %v240_v56  ;;  %v276_v6 = vmax.f32 %v274_v54, %v275_v62  ;;  %v284_v7 = vrot.slane %v283_v63, 1  ;;  %v292_v10 = vmin.f32 %v290_v58, %v291_v1 }
  0x49   : > { %v319_v9 = vsel %vm318_vm2, %v258_v61, %v317_v3  ;;  %v299_v11 = vmin.f32 %v297_v59, %v298_v2  ;;  %v305_v12 = vsel %vm231_vm0, %v1025_v5, inf  ;;  %vm349_vm4 = vcmask 84008  }
  0x4a   : > { %326 = vrot.lane.b32.xlu0 %v319_v9, %s892_s25  ;;  %v322_v13 = vsel %vm321_vm3, %v319_v9, 0.0  ;;  %v285_v14 = vmax.f32 %v283_v63, %v284_v7  ;;  %v343_v15 = vsel %vm316_vm1, %v276_v6, %v267_v0  ;;  %v306_v16 = vmin.f32 %v304_v8, %v305_v12 }
  0x4b   : > { %323 = vadd.xlane.f32.xlu1 %v322_v13  ;;  %v300_v17 = vrot.slane %v299_v11, 2  ;;  %v293_v4 = vrot.slane %v292_v10, 1  ;;  %vm353_vm5 = vcmask 125008   ;;  %v894_v40 = vmov 0.0  }
  0x4c   : > { %v344_v18 = vsel %vm318_vm2, %v285_v14, %v343_v15  ;;  %v307_v19 = vrot.slane %v306_v16, 4  ;;  %689 = vmatprep.subr.mxu0 %v894_v40  ;;  %vm461_vm6 = vcmask 1042432   ;;  %vm895_vm7 = vmmov 0  }
  0x4d   : > { %v301_v20 = vmin.f32 %v299_v11, %v300_v17  ;;  %v294_v22 = vmin.f32 %v292_v10, %v293_v4  ;;  %v346_v32 = vsel %vm321_vm3, %v344_v18, -inf  ;;  %v350_v35 = vsel %vm349_vm4, %v344_v18, -inf  ;;  %690 = vmatpush3.msk.msra.mxu0 %vm461_vm6, %v455_v41  ;;  %697 = vmatprep.mubr.msk.f32.mxu0 %vm895_vm7, %v894_v40 }
  0x4e   : > { %333 = vrot.lane.b32.xlu0 %v319_v9, %s893_s7  ;;  %v308_v21 = vmin.f32 %v306_v16, %v307_v19  ;;  %v354_v36 = vsel %vm353_vm5, %v344_v18, -inf  ;;  %691 = vmatprep.subr.mxu0 %v894_v40  ;;  %v373_v46 = vlaneseq  ;;  %vm436_vm8 = vcmask 23552   ;;  %s1084_s7 = scalar_lea.hbm %s1157_s3, %s680_s9 }
  0x4f   : > { %v302_v5 = vrot.slane %v301_v20, 1  ;;  %692 = vmatpush3.msra.mxu0 %v454_v42  ;;  %vm438_vm9 = vcmask 48128   ;;  %vm440_vm10 = vcmask 72704   ;;  %vm442_vm11 = vcmask 97280  }
  0x50   : > { %v309_v23 = vrot.slane %v308_v21, 2  ;;  %693 = vmatprep.subr.mxu0 %v894_v40  ;;  %v374_v48 = vand.u32 127, %v373_v46  ;;  %v376_v52 = vshrl.u32 %v373_v46, 7  ;;  %vm444_vm12 = vcmask 121856  }
  0x51   : > { %v303_v24 = vmin.f32 %v301_v20, %v302_v5  ;;  %694 = vmatpush3.msra.mxu0 %v453_v43  ;;  %vm446_vm13 = vcmask 146432   ;;  %vm448_vm14 = vcmask 171008   ;;  %vm450_vm15 = vcmask 195584  }
  0x52   : > { %v310_v25 = vmin.f32 %v308_v21, %v309_v23  ;;  %695 = vmatprep.subr.mxu0 %v894_v40  ;;  %v381_v49 = vadd.s32 4294967293, %v374_v48  ;;  %v388_v51 = vadd.s32 4294967290, %v374_v48  ;;  %v377_v59 = vsub.s32 %v374_v48, %v376_v52 }
  0x53   : > { %v360_v27 = vsel %vm316_vm1, %v303_v24, %v294_v22  ;;  %696 = vmatpush3.msra.mxu0 %v452_v44  ;;  %v395_v61 = vadd.s32 4294967287, %v374_v48  ;;  %v402_v62 = vadd.s32 4294967284, %v374_v48  ;;  %v409_v0 = vadd.s32 4294967281, %v374_v48 }
  0x54   : > { %v311_v26 = vrot.slane %v310_v25, 1  ;;  %v384_v54 = vsub.s32 %v381_v49, %v376_v52  ;;  %v391_v57 = vsub.s32 %v388_v51, %v376_v52  ;;  %v416_v3 = vadd.s32 4294967278, %v374_v48 }
  0x55   : > { %v398_v7 = vsub.s32 %v395_v61, %v376_v52  ;;  %v423_v8 = vadd.s32 4294967275, %v374_v48  ;;  %v405_v9 = vsub.s32 %v402_v62, %v376_v52  ;;  %v412_v11 = vsub.s32 %v409_v0, %v376_v52 }
  0x56   : > { %v312_v28 = vmin.f32 %v310_v25, %v311_v26  ;;  %v419_v14 = vsub.s32 %v416_v3, %v376_v52  ;;  %v430_v15 = vadd.s32 4294967272, %v374_v48  ;;  %vm457_vm0 = vcmask 220160  }
  0x57   : > { %v426_v17 = vsub.s32 %v423_v8, %v376_v52  ;;  %vm541_vm1 = vcmask 16384  }
  0x58   : > { %v361_v29 = vsel %vm318_vm2, %v312_v28, %v360_v27  ;;  %v433_v22 = vsub.s32 %v430_v15, %v376_v52 }
  0x59   : > { %v363_v37 = vsel %vm321_vm3, %v361_v29, inf  ;;  %v366_v38 = vsel %vm349_vm4, %v361_v29, inf  ;;  %v369_v39 = vsel %vm353_vm5, %v361_v29, inf }
  0xbc   : > { %v327_v30 = vpop.permute.xlu0 %326 }
  0xbd   : > { %v329_v31 = vsel %vm321_vm3, %v327_v30, 0.0  ;;  %v456_v30 = vld [vmem:[%s1156_s2] sm:$0x1] }
  0xbe   : > { %330 = vadd.xlane.f32.xlu1 %v329_v31 }
  0xc0   : > { %v334_v33 = vpop.permute.xlu0 %333 }
  0xc1   : > { %v336_v34 = vsel %vm321_vm3, %v334_v33, 0.0 }
  0xc2   : > { %337 = vadd.xlane.f32.xlu0 %v336_v34  ;;  %347 = vmax.xlane.f32.xlu1 %v346_v32 }
  0xc6   : > { %351 = vmax.xlane.f32.xlu1 %v350_v35 }
  0xca   : > { %355 = vmax.xlane.f32.xlu1 %v354_v36 }
  0xce   : > { %364 = vmin.xlane.f32.xlu1 %v363_v37 }
  0xd2   : > { %367 = vmin.xlane.f32.xlu1 %v366_v38 }
  0xd4   : > { %v324_v45 = vpop.xlane.xlu1 %323 }
  0xd5   : > { %v325_v60 = vmul.f32 0.010416667, %v324_v45 }
  0xd6   : > { %370 = vmin.xlane.f32.xlu1 %v369_v39 }
  0xd7   : > { %v378_v6 = vrot.slane %v325_v60, %v377_v59 }
 0x147   : > { %v331_v47 = vpop.xlane.xlu1 %330 }
 0x148   : > { %v332_v55 = vmul.f32 0.010416667, %v331_v47 }
 0x14a   : > { %v385_v63 = vrot.slane %v332_v55, %v384_v54 }
 0x14b   : > { %v348_v50 = vpop.xlane.xlu1 %347  ;;  %v338_v53 = vpop.xlane.xlu0 %337 }
 0x14c   : > { %v339_v58 = vmul.f32 0.010416667, %v338_v53  ;;  %v437_v10 = vsel %vm436_vm8, %v378_v6, %v385_v63  ;;  %v399_v16 = vrot.slane %v348_v50, %v398_v7 }
 0x14e   : > { %v392_v2 = vrot.slane %v339_v58, %v391_v57 }
 0x14f   : > { %v352_v56 = vpop.xlane.xlu1 %351 }
 0x150   : > { %v439_v13 = vsel %vm438_vm9, %v437_v10, %v392_v2  ;;  %v406_v18 = vrot.slane %v352_v56, %v405_v9 }
 0x151   : > { %v441_v4 = vsel %vm440_vm10, %v439_v13, %v399_v16 }
 0x152   : > { %v443_v23 = vsel %vm442_vm11, %v441_v4, %v406_v18 }
 0x153   : > { %v356_v1 = vpop.xlane.xlu1 %355 }
 0x154   : > { %v413_v19 = vrot.slane %v356_v1, %v412_v11 }
 0x156   : > { %v445_v24 = vsel %vm444_vm12, %v443_v23, %v413_v19 }
 0x157   : > { %v365_v12 = vpop.xlane.xlu1 %364 }
 0x158   : > { %v420_v21 = vrot.slane %v365_v12, %v419_v14 }
 0x15a   : > { %v447_v26 = vsel %vm446_vm13, %v445_v24, %v420_v21 }
 0x15b   : > { %v368_v20 = vpop.xlane.xlu1 %367 }
 0x15c   : > { %v427_v5 = vrot.slane %v368_v20, %v426_v17 }
 0x15e   : > { %v449_v28 = vsel %vm448_vm14, %v447_v26, %v427_v5 }
 0x15f   : > { %v371_v25 = vpop.xlane.xlu1 %370 }
 0x160   : > { %v434_v27 = vrot.slane %v371_v25, %v433_v22 }
 0x162   : > { %v451_v29 = vsel %vm450_vm15, %v449_v28, %v434_v27 }
 0x163   : > { %698 = vmatmul.mubr.msk.f32.vlgmr.msra.gmra.mxu0 %vm457_vm0, %v451_v29 }
 0x223   : > { %v531_v31 = vpop.f32.mrf.mxu0 }
 0x224   : > { %v532_v32 = vadd.f32 %v531_v31, %v456_v30 }
 0x225   : > { %v699_v33 = vpop.f32.mrf.mxu0 }
 0x226   : > { %v679_v34 = vmul.f32 -1.442695, %v532_v32 }
 0x228   : > { %761 = vpow2.f32 %v679_v34 }
 0x235   : > { %v762_v35 = vpop.eup %761 }
 0x236   : > { %v538_v36 = vadd.f32 1.0, %v762_v35 }
 0x238   : > { %763 = vrcp.f32 %v538_v36 }
 0x245   : > { %v764_v37 = vpop.eup %763 }
 0x246   : > { %544 = vrot.lane.b32.xlu1 %v764_v37, %s896_s8  ;;  %542 = vst.msk [vmem:[%s218_s13] sm:$0x1] %vm541_vm1, %v764_v37 }
 0x247   : > { %806 = shalt.err (!%p803_p10)
}
 0x248   : > { %s807_s29 = scalar_lea.hbm %s1084_s7, 16  ;;  %s811_s6 = scalar_lea.hbm %s1157_s3, 32 }
 0x249   : > { %p808_p0 = scmp.ne.s32.totalorder %s1084_s7, %s807_s29  ;;  %p812_p1 = scmp.lt.s32.totalorder %s1084_s7, %s1157_s3 }
 0x24a   : > { %p813_p3 = scmp.lt.s32.totalorder %s811_s6, %s807_s29 }
 0x24b   : > { %p809_p2 = pnand %p808_p0, %p1166_p12 }
 0x24c   : > { %p814_p6 = por %p813_p3, %p812_p1 }
 0x24d   : > { %p810_p9 = pneg %p809_p2 }
 0x24f   : > { %p815_p11 = pnand %p814_p6, %p810_p9 }
 0x251   : > { %818 = shalt.err (!%p815_p11)
}
 0x252   : > { %705 = dma.vmem_to_hbm [thread:$0]  (%p1166_p12), %s1086_s14, 16, %s1084_s7, %s549_s10  }
 0x253   : > { %s224_s25 = scalar_lea.vmem [#allocation6], %s1015_s12  ;;  %s1116_s23 = scalar_lea.hbm %s1158_s4, %s680_s9 }
 0x254   : > { %s578_s8 = sshll.u32 %s224_s25, 4  ;;  %s553_s28 = scalar_lea.sflag [#allocation7], %s1015_s12  ;;  %s579_s8 = int_to_ptr.vmem [resolvable:$true] %s578_s8 }
 0x255   : > { %s819_s29 = scalar_lea.vmem %s579_s8, 16  ;;  %s898_s30 = smov [#allocation6]  }
 0x256   : > { %p820_p13 = scmp.ne.s32.totalorder %s579_s8, %s819_s29  ;;  %s823_s14 = sshll.u32 %s898_s30, 4  ;;  %s824_s14 = int_to_ptr.vmem [resolvable:$false] %s823_s14 }
 0x257   : > { %s825_s7 = scalar_lea.vmem %s824_s14, 32  ;;  %p826_p7 = scmp.lt.s32.totalorder %s579_s8, %s824_s14 }
 0x258   : > { %p821_p4 = pnand %p820_p13, %p1166_p12  ;;  %p827_p8 = scmp.lt.s32.totalorder %s825_s7, %s819_s29 }
 0x25a   : > { %p822_p5 = pneg %p821_p4  ;;  %p828_p10 = por %p827_p8, %p826_p7 }
 0x25c   : > { %p829_p0 = pnand %p828_p10, %p822_p5 }
 0x2b8   : > { %v545_v38 = vpop.permute.xlu1 %544 }
 0x2b9   : > { %547 = vst.msk [vmem:[%s224_s25] sm:$0x1] %vm541_vm1, %v545_v38 }
 0x2ba   : > { %832 = shalt.err (!%p829_p0)
}
 0x2bb   : > { %s833_s19 = scalar_lea.hbm %s1116_s23, 16  ;;  %s837_s10 = scalar_lea.hbm %s1158_s4, 32 }
 0x2bc   : > { %p834_p2 = scmp.ne.s32.totalorder %s1116_s23, %s833_s19  ;;  %p838_p3 = scmp.lt.s32.totalorder %s1116_s23, %s1158_s4 }
 0x2bd   : > { %p839_p6 = scmp.lt.s32.totalorder %s837_s10, %s833_s19 }
 0x2be   : > { %p835_p9 = pnand %p834_p2, %p1166_p12 }
 0x2bf   : > { %p840_p11 = por %p839_p6, %p838_p3 }
 0x2c0   : > { %p836_p1 = pneg %p835_p9 }
 0x2c2   : > { %p841_p13 = pnand %p840_p11, %p836_p1 }
 0x2c4   : > { %844 = shalt.err (!%p841_p13)
}
 0x2c5   : > { %706 = dma.vmem_to_hbm [thread:$0]  (%p1166_p12), %s579_s8, 16, %s1116_s23, %s553_s28  }
 0x2c6 PF: > { %s590_s13 = sand.u32 1, %s875_s15   ;;  %p1167_p4 = scmp.ne.s32.totalorder %s1163_s27, 0 }
 0x2c7   : > { %p1168_p5 = scmp.ge.s32.totalorder %s887_s18, 2  ;;  %s591_s20 = scalar_lea.sflag [#allocation4], %s590_s13 }
 0x2c9   : > { %p714_p7 = pnand %p1168_p5, %p1167_p4 }
 0x2cb   : > { %p715_p8 = pneg %p714_p7 }
 0x2cd   : > { %866 = dma.done.wait (%p715_p8), %s591_s20, 16  }
 0x2ce   : > { %868 = vsyncadd (%p715_p8), %s591_s20, 4294967280  ;;  %s599_s25 = scalar_lea.sflag [#allocation7], %s590_s13 }
 0x2cf   : > { %870 = dma.done.wait (%p715_p8), %s599_s25, 16  }
 0x2d0   : > { %872 = vsyncadd (%p715_p8), %s599_s25, 4294967280  ;;  %p21_p12 = scmp.ge.s32.totalorder %s949_s21, 4   ;;  %s1169_s15 = smov %s879_s16 }
 0x2d1   : > { %s1170_s16 = smov %s883_s17  ;;  %s1171_s17 = smov %s961_s24 }
 0x2d2   : > { %s1172_s18 = smov %s949_s21  ;;  %23 = sbr.rel (!%p21_p12) target bundleno = 7 (0x7), region = 94 }
 0x2d7   :  { %603 = vsyncpa [#allocation3], 1 }
 0x2d8   :  { %605 = vsyncpa [#allocation3 + $0x1], 1 }
 0x2d9   :  { %606 = vsyncpa [#allocation4], 1 }
 0x2da   :  { %608 = vsyncpa [#allocation4 + $0x1], 1 }
 0x2db   :  { %609 = vsyncpa [#allocation7], 1 }
 0x2dc   :  { %611 = vsyncpa [#allocation7 + $0x1], 1 }

</bundles_post_ra>
